<compile_context>
chip_gen: v7x
topology: tpu7x:2x2x1
jax: 0.10.0
libtpu: 0.0.40
codegen_flags: <defaults>
</compile_context>

<pallas_src>
import jax
import jax.numpy as jnp
from jax.experimental import pallas as pl
from jax.experimental.pallas import tpu as pltpu


# -------------------------- kernel body (VPU) --------------------------- #
def _relu_kernel(x_ref, o_ref):
    # Pure elementwise ReLU on the whole VMEM tile.  `0` is weakly typed, so
    # no zeros tile is materialized and the result keeps x's dtype.
    o_ref[...] = jnp.maximum(x_ref[...], 0)


# ------------------------------ helpers --------------------------------- #
def _round_up(x: int, m: int) -> int:
    return ((x + m - 1) // m) * m


def _round_down(x: int, m: int) -> int:
    return (x // m) * m


def _sublane_multiple(dtype) -> int:
    # Sub-32-bit dtypes pack along sublanes: f32 -> 8, bf16 -> 16, int8 -> 32.
    itemsize = jnp.dtype(dtype).itemsize
    return max(8, 32 // itemsize)


def _pick_lanes(total: int) -> int:
    # Largest lane-dense last dim that divides the element count exactly.
    for lanes in (1024, 512, 256, 128):
        if total % lanes == 0:
            return lanes
    return 0


def _chip_config():
    """Generation-aware knobs: (tile_bytes, vmem_limit_bytes, min_pallas_bytes,
    multi_core).  multi_core=True -> prefer >=2 grid steps so both TensorCores
    share this mem-bound kernel."""
    try:
        kind = jax.devices()[0].device_kind.lower()
    except Exception:
        kind = ""
    if "v7" in kind:
        # ~3.2 TB/s HBM, 64 MiB VMEM/TC, 2 TCs/chip.
        return 5 * 2**20, 48 * 2**20, 1 * 2**20, True
    if "v6" in kind:
        # ~1.4 TB/s HBM, 128 MiB VMEM, 1 TC.
        return 4 * 2**20, 32 * 2**20, 512 * 1024, False
    if "v5 lite" in kind or "v5lite" in kind or "v5e" in kind:
        # ~820 GB/s HBM: 2 MiB tiles already ~93% amortized; don't grow them.
        return 2 * 2**20, 32 * 2**20, 256 * 1024, False
    # Unknown / v4 / v5p (megacore, 2 TCs): conservative tiles, allow split.
    return 2 * 2**20, 32 * 2**20, 256 * 1024, True


# --------------------------- pallas dispatch ----------------------------- #
def _relu_pallas_2d(x2d: jax.Array, tile_rows: int, vmem_limit_bytes: int) -> jax.Array:
    rows, lanes = x2d.shape
    total = rows * lanes
    itemsize = jnp.dtype(x2d.dtype).itemsize
    return pl.pallas_call(
        _relu_kernel,
        out_shape=jax.ShapeDtypeStruct((rows, lanes), x2d.dtype),
        grid_spec=pltpu.PrefetchScalarGridSpec(
            num_scalar_prefetch=0,
            grid=(pl.cdiv(rows, tile_rows),),   # partial last tile handled by Pallas
            in_specs=[pl.BlockSpec((tile_rows, lanes), lambda i: (i, 0))],
            out_specs=pl.BlockSpec((tile_rows, lanes), lambda i: (i, 0)),
        ),
        compiler_params=pltpu.CompilerParams(
            dimension_semantics=("parallel",),
            vmem_limit_bytes=vmem_limit_bytes,
        ),
        cost_estimate=pl.CostEstimate(
            flops=total,
            transcendentals=0,
            bytes_accessed=2 * total * itemsize,
        ),
    )(x2d)


def _relu_pallas_aligned(x_flat: jax.Array, tile_bytes: int, vmem_limit: int,
                         multi_core: bool) -> jax.Array:
    """ReLU over a flat array whose length is a multiple of 128 (no padding)."""
    total = x_flat.size
    dtype = x_flat.dtype
    itemsize = jnp.dtype(dtype).itemsize
    sub = _sublane_multiple(dtype)
    lanes = _pick_lanes(total)
    rows = total // lanes

    # Largest dtype-aligned row-tile hitting the per-generation tile budget.
    tile_rows = max(sub, _round_down(tile_bytes // (lanes * itemsize), sub))
    if multi_core and rows > sub:
        # Guarantee >=2 grid steps so both TensorCores get HBM work.
        tile_rows = min(tile_rows, _round_up(pl.cdiv(rows, 2), sub))
    # If this clamps to `rows`, the block equals the full array dim (allowed
    # by the (8,128) rule); otherwise it stays a multiple of `sub`.
    tile_rows = min(tile_rows, rows)

    x2d = x_flat.reshape(rows, lanes)
    return _relu_pallas_2d(x2d, tile_rows, vmem_limit).reshape(-1)


# ------------------------------ wrapper ---------------------------------- #
def inner_forward_impl_wrapper_activation(
    quant_input: jax.Array, *, force_pallas: bool = False
) -> jax.Array:
    """Applies the wrapped activation (ReLU) — Pallas TPU kernel hot path.

    Works for arbitrary shapes/dtypes: the tensor is flattened (free bitcast),
    the lane-aligned bulk is streamed through the Pallas kernel with no
    padding copies, and any <128-element tail is handled by plain jnp.
    """
    orig_shape = quant_input.shape
    total = quant_input.size
    if total == 0:
        return quant_input
    itemsize = jnp.dtype(quant_input.dtype).itemsize

    tile_bytes, vmem_limit, min_pallas_bytes, multi_core = _chip_config()

    # Tiny activations: fixed pallas_call/pipeline overhead dwarfs HBM traffic
    # and XLA can fuse the ReLU into its producer for free.
    if total * itemsize < min_pallas_bytes and not force_pallas:
        return jnp.maximum(quant_input, 0)

    aligned = _round_down(total, 128)
    if aligned == 0:
        # Fewer than 128 elements: not worth a kernel launch at all.
        return jnp.maximum(quant_input, 0)

    x_flat = quant_input.reshape(-1)
    if aligned == total:
        out_flat = _relu_pallas_aligned(x_flat, tile_bytes, vmem_limit, multi_core)
    else:
        # Ragged: Pallas on the lane-aligned prefix, tiny tail in plain jnp.
        # Avoids materializing a padded copy and a sliced copy of the tensor.
        head = _relu_pallas_aligned(x_flat[:aligned], tile_bytes, vmem_limit,
                                    multi_core)
        tail = jnp.maximum(x_flat[aligned:], 0)
        out_flat = jnp.concatenate([head, tail])

    return out_flat.reshape(orig_shape)


# ------------------------------- demo ------------------------------------ #
if __name__ == "__main__":
    key = jax.random.PRNGKey(0)
    k1, k2, k3 = jax.random.split(key, 3)

    # NCHW input matching the module's canonical use: batch=2, channels=4, 16x16.
    x = jax.random.normal(k1, (2, 4, 16, 16), dtype=jnp.float32)
    y = inner_forward_impl_wrapper_activation(x, force_pallas=True)
    y = jax.block_until_ready(y)
    assert y.shape == x.shape and y.dtype == x.dtype
    assert jnp.allclose(y, jnp.maximum(x, 0.0)), "mismatch vs reference ReLU (f32)"

    # Ragged shape (not a multiple of 128): exercises the prefix + tail path.
    xr = jax.random.normal(k2, (3, 5, 7, 11), dtype=jnp.float32)
    yr = jax.block_until_ready(
        inner_forward_impl_wrapper_activation(xr, force_pallas=True)
    )
    assert yr.shape == xr.shape and yr.dtype == xr.dtype
    assert jnp.allclose(yr, jnp.maximum(xr, 0.0)), "mismatch vs reference ReLU (ragged)"

    # bf16 input: exercises dtype-aware (16-row) sublane tiling.
    xb = jax.random.normal(k3, (2, 4, 16, 16), dtype=jnp.bfloat16)
    yb = jax.block_until_ready(
        inner_forward_impl_wrapper_activation(xb, force_pallas=True)
    )
    assert yb.shape == xb.shape and yb.dtype == xb.dtype
    assert jnp.array_equal(yb, jnp.maximum(xb, jnp.bfloat16(0))), "mismatch (bf16)"

    print("KERNEL_OK")
</pallas_src>

<mosaic_0001>
module attributes {stable_mosaic.version = 11 : i64} {
  func.func @_relu_kernel(%arg0: i32, %arg1: memref<2x1024xf32, #tpu.memory_space<vmem>>, %arg2: memref<2x1024xf32, #tpu.memory_space<vmem>>) attributes {dimension_semantics = [#tpu.dimension_semantics<parallel>], iteration_bounds = array<i64: 1>, scalar_prefetch = 0 : i64, scratch_operands = 0 : i64, tpu.core_type = #tpu.core_type<tc>, window_params = [{transform_indices = @transform_0, window_bounds = array<i64: 2, 1024>}, {transform_indices = @transform_1, window_bounds = array<i64: 2, 1024>}]} {
    %c0 = arith.constant 0 : index
    %c0_0 = arith.constant 0 : index
    %0 = vector.load %arg1[%c0, %c0_0] : memref<2x1024xf32, #tpu.memory_space<vmem>>, vector<2x1024xf32>
    %cst = arith.constant 0.000000e+00 : f32
    %1 = vector.broadcast %cst : f32 to vector<2x1024xf32>
    %2 = arith.maximumf %0, %1 : vector<2x1024xf32>
    %c0_1 = arith.constant 0 : index
    %c0_2 = arith.constant 0 : index
    %3 = vector.load %arg2[%c0_1, %c0_2] : memref<2x1024xf32, #tpu.memory_space<vmem>>, vector<2x1024xf32>
    tpu.vector_store %arg2[%c0_1, %c0_2], %2 {strides = array<i32>} : memref<2x1024xf32, #tpu.memory_space<vmem>>, vector<2x1024xf32>,
    return
  }
  func.func @transform_0(%arg0: i32) -> (i32, i32) {
    %c0_i32 = arith.constant 0 : i32
    %c0_i32_0 = arith.constant 0 : i32
    return %arg0, %c0_i32 : i32, i32
  }
  func.func @transform_1(%arg0: i32) -> (i32, i32) {
    %c0_i32 = arith.constant 0 : i32
    %c0_i32_0 = arith.constant 0 : i32
    return %arg0, %c0_i32 : i32, i32
  }
}

</mosaic_0001>

<bundles_post_ra>
// kernel: tpu_custom_call.1
= control target key start
LH: loop header
LB: loop body
LE: loop exit
PB: predicated region body
PF: predicated region fallthrough
CT: control target
= control target key end

     0   :  { %6 = vsyncpa [#allocation3], 0  ;;  %s128_s0 = inlined_call_operand.hbm [shape: f32[2,1024], index: 0, kind: input, shape index: {}]   ;;  %s129_s1 = inlined_call_operand.hbm [shape: f32[2,1024], index: 1, kind: output, shape index: {}]  }
   0x1   :  { %7 = vsyncpa [#allocation4], 0  ;;  %s92_s6 = smov [#allocation2]   ;;  %s44_s10 = scalar_lea.hbm %s128_s0, 256 }
   0x2   :  { %s14_s7 = sshll.u32 %s92_s6, 4  ;;  %p45_p0 = scmp.ne.s32.totalorder %s128_s0, %s44_s10  ;;  %s15_s7 = int_to_ptr.vmem [resolvable:$true] %s14_s7 }
   0x3   :  { %p48_p1 = scmp.lt.u32.totalorder %s44_s10, %s128_s0 }
   0x5   :  { %p50_p2 = pnand %p48_p1, %p45_p0 }
   0x7   :  { %53 = shalt.err (!%p50_p2)
}
   0x8   :  { %s54_s15 = scalar_lea.vmem %s15_s7, 256  ;;  %p59_p4 = scmp.lt.s32.totalorder %s15_s7, %s15_s7 }
   0x9   :  { %p55_p3 = scmp.ne.s32.totalorder %s15_s7, %s54_s15  ;;  %p60_p5 = scmp.lt.s32.totalorder %s54_s15, %s54_s15 }
   0xb   :  { %p61_p6 = por %p60_p5, %p59_p4 }
   0xd   :  { %p62_p7 = pnand %p61_p6, %p55_p3 }
   0xf   :  { %65 = shalt.err (!%p62_p7)
}
  0x10   :  { %17 = dma.hbm_to_vmem [thread:$0]  %s128_s0, 256, %s15_s7, [#allocation3]  }
  0x11   :  { %88 = dma.done.wait [#allocation3], 256  }
  0x12   :  { %89 = vsyncadd [#allocation3], 4294967040  ;;  %s93_s18 = smov [#allocation5]   ;;  %v21_v0 = vld [vmem:[#allocation2] sm:$0xff]  ;;  %v22_v1 = vld [vmem:[#allocation2 + $0x8] sm:$0xff] }
  0x13   :  { %s33_s19 = sshll.u32 %s93_s18, 4  ;;  %v23_v2 = vmax.f32 %v21_v0, 0.0  ;;  %v24_v3 = vmax.f32 %v22_v1, 0.0  ;;  %s34_s19 = int_to_ptr.vmem [resolvable:$true] %s33_s19 }
  0x14   :  { %s66_s20 = scalar_lea.vmem %s34_s19, 256  ;;  %p71_p9 = scmp.lt.s32.totalorder %s34_s19, %s34_s19 }
  0x15   :  { %25 = vst [vmem:[#allocation5] sm:$0xff] %v23_v2  ;;  %26 = vst [vmem:[#allocation5 + $0x8] sm:$0xff] %v24_v3  ;;  %p67_p8 = scmp.ne.s32.totalorder %s34_s19, %s66_s20  ;;  %p72_p10 = scmp.lt.s32.totalorder %s66_s20, %s66_s20 }
  0x17   :  { %p73_p11 = por %p72_p10, %p71_p9 }
  0x19   :  { %p74_p12 = pnand %p73_p11, %p67_p8 }
  0x1b   :  { %77 = shalt.err (!%p74_p12)
}
  0x1c   :  { %s78_s22 = scalar_lea.hbm %s129_s1, 256 }
  0x1d   :  { %p79_p13 = scmp.ne.s32.totalorder %s129_s1, %s78_s22  ;;  %p82_p0 = scmp.lt.u32.totalorder %s78_s22, %s129_s1 }
  0x1f   :  { %p84_p1 = pnand %p82_p0, %p79_p13 }
  0x21   :  { %87 = shalt.err (!%p84_p1)
}
  0x22   :  { %36 = dma.vmem_to_hbm [thread:$0]  %s34_s19, 256, %s129_s1, [#allocation4]  }
  0x23   :  { %90 = dma.done.wait [#allocation4], 256  }
  0x24   :  { %91 = vsyncadd [#allocation4], 4294967040 }
  0x25   :  { %40 = vsyncpa [#allocation3], 1 }
  0x26   :  { %41 = vsyncpa [#allocation4], 1 }

</bundles_post_ra>
